<compile_context>
chip_gen: v6e
topology: v6e:2x2x1
jax: 0.10.0
libtpu: 0.0.40
codegen_flags: <defaults>
</compile_context>

<pallas_src>
import functools

import jax
import jax.numpy as jnp
from jax import lax
from jax.experimental import pallas as pl
from jax.experimental.pallas import tpu as pltpu


def _vmem_capacity_bytes():
    """Physical VMEM of the current chip (conservative fallback: v7x 64 MiB)."""
    try:
        info = pltpu.get_tpu_info()
        cap = getattr(info, "vmem_capacity_bytes", None)
        if cap:
            return int(cap)
    except Exception:
        pass
    return 64 * 1024 * 1024


def _num_tensorcores():
    """TensorCores per chip; conservative default 1 (v5e/v6e)."""
    try:
        info = pltpu.get_tpu_info()
        for name in ("num_cores", "tensorcore_count", "num_tensorcores",
                     "core_count", "cores_per_chip", "num_cores_per_chip"):
            v = getattr(info, name, None)
            if v:
                return int(v)
    except Exception:
        pass
    return 1


def _static_pow(x, gamma):
    """x ** gamma, lowered to VPU multiplies for small integer gamma."""
    g = float(gamma)
    if g == 0.0:
        return jnp.ones_like(x)
    if g == int(g) and 0 < int(g) <= 8:
        r = x
        for _ in range(int(g) - 1):
            r = r * x
        return r
    # Non-integer gamma: clamp the base so fp rounding (p_t slightly > 1)
    # cannot produce NaN from a negative base with a fractional exponent.
    return jnp.maximum(x, 0.0) ** g


def _focal_loss_kernel(x_ref, t_ref, out_ref, *, gamma, n_rows, tile_rows,
                       inner_steps, first_pad_tile):
    o = pl.program_id(0)          # outer (per-TensorCore) partition
    i = pl.program_id(1)          # inner (reduction) row-tile index

    # Output block is resident across the inner reduction axis; init once.
    @pl.when(i == 0)
    def _():
        out_ref[...] = jnp.zeros_like(out_ref)

    x = x_ref[...].astype(jnp.float32)                   # (TM, C)
    t = t_ref[...]                                       # (TM, 1) int32

    # Numerically stable log-sum-exp along the class (lane) axis.
    # Only ONE transcendental per element (the exp inside the sum).
    m = jnp.max(x, axis=-1, keepdims=True)               # (TM, 1)
    shifted = x - m                                      # (TM, C)
    lse = jnp.log(jnp.sum(jnp.exp(shifted), axis=-1, keepdims=True))  # (TM, 1)

    # Gather shifted[row, target[row]] with a one-hot mask-sum (no per-row
    # dynamic gather on the TPU vector path).
    cls_ids = lax.broadcasted_iota(jnp.int32, shifted.shape, 1)
    picked = jnp.sum(jnp.where(cls_ids == t, shifted, 0.0),
                     axis=-1, keepdims=True)             # (TM, 1)

    # Focal weighting only on the gathered element (per-row scalars).
    log_p_t = picked - lse                               # = log_softmax[row, t]
    p_t = jnp.exp(log_p_t)                               # per-row exp only
    w = _static_pow(1.0 - p_t, gamma)
    row_loss = -(w * log_p_t)                            # (TM, 1)

    if first_pad_tile is None:
        # No padding anywhere: accumulate the tile's partial sum directly
        # into the resident lane-dense output block.
        out_ref[...] += jnp.broadcast_to(jnp.sum(row_loss), out_ref.shape)
    else:
        tile_idx = o * inner_steps + i
        has_pad = tile_idx >= first_pad_tile

        @pl.when(jnp.logical_not(has_pad))
        def _():
            out_ref[...] += jnp.broadcast_to(jnp.sum(row_loss), out_ref.shape)

        @pl.when(has_pad)
        def _():
            # Only tiles that can contain padded rows pay for the mask.
            row_ids = tile_idx * tile_rows + lax.broadcasted_iota(
                jnp.int32, row_loss.shape, 0)
            masked = jnp.where(row_ids < n_rows, row_loss, 0.0)
            out_ref[...] += jnp.broadcast_to(jnp.sum(masked), out_ref.shape)


def focal_loss(logits, targets, gamma=2.0, *, tile_rows=None):
    """logits: (N, C) float, targets: (N,) int. Returns scalar f32 mean loss."""
    n, c = logits.shape
    in_itemsize = jnp.dtype(logits.dtype).itemsize
    sublane = max(8, 32 // in_itemsize)        # 8 f32 / 16 bf16 / 32 int8
    cap = _vmem_capacity_bytes()

    # Per-row VMEM model:
    #   2x logits block (double-buffered input stream, native dtype)
    #   ~3x full-width f32 intermediates (shift / exp / one-hot chain)
    #   2x targets block ((tile_rows,1) int32 lane-pads to 128 lanes, dbl-buf)
    #   ~6x per-row f32 column intermediates (m, lse, picked, p_t, w, loss)
    col = 128 * 4
    per_row = 2 * c * in_itemsize + 3 * c * 4 + 2 * col + 6 * col

    if tile_rows is None:
        budget = cap // 2                       # generous: vmem_limit is raised
        tile_rows = max(sublane, budget // per_row)
    tile_rows = max(sublane, int(tile_rows) // sublane * sublane)
    n_rounded = -(-n // sublane) * sublane
    tile_rows = min(tile_rows, n_rounded)

    total_tiles = -(-n // tile_rows)
    num_cores = _num_tensorcores()
    g_outer = num_cores if (num_cores > 1 and total_tiles >= num_cores) else 1
    g_inner = -(-total_tiles // g_outer)
    n_pad = g_outer * g_inner * tile_rows

    targets2d = targets.astype(jnp.int32).reshape(n, 1)
    if n_pad != n:
        logits = jnp.pad(logits, ((0, n_pad - n), (0, 0)))
        targets2d = jnp.pad(targets2d, ((0, n_pad - n), (0, 0)))
        first_pad_tile = n // tile_rows         # tiles >= this may hold padding
    else:
        first_pad_tile = None

    # Leave >= 16 MiB of compiler scratch headroom (important on 64 MiB v7x).
    vmem_limit = int(max(32 << 20, cap - (16 << 20)))

    kernel = functools.partial(
        _focal_loss_kernel, gamma=gamma, n_rows=n, tile_rows=tile_rows,
        inner_steps=g_inner, first_pad_tile=first_pad_tile)

    def build(outer_sem):
        return pl.pallas_call(
            kernel,
            out_shape=jax.ShapeDtypeStruct((g_outer, 8, 128), jnp.float32),
            grid_spec=pltpu.PrefetchScalarGridSpec(
                num_scalar_prefetch=0,
                grid=(g_outer, g_inner),
                in_specs=[
                    pl.BlockSpec((tile_rows, c),
                                 lambda o, i: (o * g_inner + i, 0)),
                    pl.BlockSpec((tile_rows, 1),
                                 lambda o, i: (o * g_inner + i, 0)),
                ],
                out_specs=pl.BlockSpec((1, 8, 128), lambda o, i: (o, 0, 0)),
            ),
            compiler_params=pltpu.CompilerParams(
                dimension_semantics=(outer_sem, "arbitrary"),
                vmem_limit_bytes=vmem_limit,
            ),
        )

    if g_outer > 1:
        # Only CORE_PARALLEL actually places grid iterations on the 2nd core.
        core_parallel = getattr(pltpu, "CORE_PARALLEL", "parallel")
        try:
            partials = build(core_parallel)(logits, targets2d)
        except Exception:
            partials = build("parallel")(logits, targets2d)
    else:
        partials = build("arbitrary")(logits, targets2d)

    # Each partition's tile is a broadcast of its partial sum; take one
    # element per partition, reduce, and apply the mean over the true N.
    return jnp.sum(partials[:, 0, 0]) / jnp.float32(n)


def _focal_loss_ref(logits, targets, gamma=2.0):
    log_prob = jax.nn.log_softmax(logits.astype(jnp.float32), axis=-1)
    prob = jnp.exp(log_prob)
    focal = ((1.0 - prob) ** gamma) * log_prob
    picked = jnp.take_along_axis(focal, targets[:, None].astype(jnp.int32), axis=-1)
    return -jnp.mean(picked)


if __name__ == "__main__":
    # FocalLoss(weight=None, gamma=2.0, reduction='mean') — no learned params.
    key = jax.random.PRNGKey(0)
    ks = jax.random.split(key, 10)

    # Case 1: aligned shapes, f32.
    N, C = 16, 128
    logits = jax.random.normal(ks[0], (N, C), dtype=jnp.float32)
    targets = jax.random.randint(ks[1], (N,), 0, C, dtype=jnp.int32)
    loss = jax.block_until_ready(focal_loss(logits, targets, gamma=2.0))
    ref = _focal_loss_ref(logits, targets, gamma=2.0)
    assert jnp.allclose(loss, ref, atol=1e-5, rtol=1e-5), (loss, ref)

    # Case 2: N not a multiple of the sublane (exercises padding + row mask).
    N2, C2 = 13, 128
    logits2 = jax.random.normal(ks[2], (N2, C2), dtype=jnp.float32)
    targets2 = jax.random.randint(ks[3], (N2,), 0, C2, dtype=jnp.int32)
    loss2 = jax.block_until_ready(focal_loss(logits2, targets2, gamma=2.0))
    ref2 = _focal_loss_ref(logits2, targets2, gamma=2.0)
    assert jnp.allclose(loss2, ref2, atol=1e-5, rtol=1e-5), (loss2, ref2)

    # Case 3: multiple row tiles (explicit small tile) + accumulation.
    N3, C3 = 40, 128
    logits3 = jax.random.normal(ks[4], (N3, C3), dtype=jnp.float32)
    targets3 = jax.random.randint(ks[5], (N3,), 0, C3, dtype=jnp.int32)
    loss3 = jax.block_until_ready(focal_loss(logits3, targets3, gamma=2.0,
                                             tile_rows=8))
    ref3 = _focal_loss_ref(logits3, targets3, gamma=2.0)
    assert jnp.allclose(loss3, ref3, atol=1e-5, rtol=1e-5), (loss3, ref3)

    # Case 4: small, non-128-aligned class count (typical focal-loss config).
    N4, C4 = 24, 10
    logits4 = jax.random.normal(ks[6], (N4, C4), dtype=jnp.float32)
    targets4 = jax.random.randint(ks[7], (N4,), 0, C4, dtype=jnp.int32)
    loss4 = jax.block_until_ready(focal_loss(logits4, targets4, gamma=2.0))
    ref4 = _focal_loss_ref(logits4, targets4, gamma=2.0)
    assert jnp.allclose(loss4, ref4, atol=1e-5, rtol=1e-5), (loss4, ref4)

    # Case 5: bf16 logits (half the HBM bytes; tile rounds to multiples of 16).
    N5, C5 = 40, 128
    logits5 = jax.random.normal(ks[8], (N5, C5), dtype=jnp.float32).astype(jnp.bfloat16)
    targets5 = jax.random.randint(ks[9], (N5,), 0, C5, dtype=jnp.int32)
    loss5 = jax.block_until_ready(focal_loss(logits5, targets5, gamma=2.0))
    ref5 = _focal_loss_ref(logits5, targets5, gamma=2.0)
    assert jnp.allclose(loss5, ref5, atol=1e-5, rtol=1e-5), (loss5, ref5)

    print("KERNEL_OK")
</pallas_src>

<mosaic_0001>
module attributes {stable_mosaic.version = 11 : i64} {
  func.func @_focal_loss_kernel(%arg0: i32, %arg1: i32, %arg2: memref<16x128xf32, #tpu.memory_space<vmem>>, %arg3: memref<16x1xi32, #tpu.memory_space<vmem>>, %arg4: memref<1x8x128xf32, #tpu.memory_space<vmem>>) attributes {dimension_semantics = [#tpu.dimension_semantics<arbitrary>, #tpu.dimension_semantics<arbitrary>], iteration_bounds = array<i64: 1, 1>, scalar_prefetch = 0 : i64, scratch_operands = 0 : i64, tpu.core_type = #tpu.core_type<tc>, window_params = [{transform_indices = @transform_0, window_bounds = array<i64: 16, 128>}, {transform_indices = @transform_1, window_bounds = array<i64: 16, 1>}, {transform_indices = @transform_2, window_bounds = array<i64: 1, 8, 128>}]} {
    %c0_i32 = arith.constant 0 : i32
    %0 = arith.cmpi eq, %arg1, %c0_i32 : i32
    %1 = arith.extui %0 : i1 to i32
    %c0_i32_0 = arith.constant 0 : i32
    %2 = arith.cmpi ne, %1, %c0_i32_0 : i32
    scf.if %2 {
      %cst_16 = arith.constant 0.000000e+00 : f32
      %36 = vector.broadcast %cst_16 : f32 to vector<1x8x128xf32>
      %c0_17 = arith.constant 0 : index
      %c0_18 = arith.constant 0 : index
      %c0_19 = arith.constant 0 : index
      %37 = vector.load %arg4[%c0_17, %c0_18, %c0_19] : memref<1x8x128xf32, #tpu.memory_space<vmem>>, vector<1x8x128xf32>
      tpu.vector_store %arg4[%c0_17, %c0_18, %c0_19], %36 {strides = array<i32>} : memref<1x8x128xf32, #tpu.memory_space<vmem>>, vector<1x8x128xf32>,
    } else {
    }
    %c0 = arith.constant 0 : index
    %c0_1 = arith.constant 0 : index
    %3 = vector.load %arg2[%c0, %c0_1] : memref<16x128xf32, #tpu.memory_space<vmem>>, vector<16x128xf32>
    %c0_2 = arith.constant 0 : index
    %c0_3 = arith.constant 0 : index
    %4 = vector.load %arg3[%c0_2, %c0_3] : memref<16x1xi32, #tpu.memory_space<vmem>>, vector<16x1xi32>
    %cst = arith.constant dense<0xFF800000> : vector<16xf32>
    %5 = vector.multi_reduction <maximumf>, %3, %cst [1] : vector<16x128xf32> to vector<16xf32>
    %6 = vector.shape_cast %5 : vector<16xf32> to vector<16x1xf32>
    %7 = vector.broadcast %6 : vector<16x1xf32> to vector<16x128xf32>
    %8 = arith.subf %3, %7 : vector<16x128xf32>
    %9 = math.exp %8 : vector<16x128xf32>
    %cst_4 = arith.constant dense<0.000000e+00> : vector<16xf32>
    %10 = vector.multi_reduction <add>, %9, %cst_4 [1] : vector<16x128xf32> to vector<16xf32>
    %11 = vector.shape_cast %10 : vector<16xf32> to vector<16x1xf32>
    %12 = math.log %11 : vector<16x1xf32>
    %13 = tpu.iota {dimensions = array<i32: 1>} : vector<16x128xi32>
    %14 = vector.broadcast %4 : vector<16x1xi32> to vector<16x128xi32>
    %15 = arith.cmpi eq, %13, %14 : vector<16x128xi32>
    %cst_5 = arith.constant 0.000000e+00 : f32
    %16 = vector.broadcast %cst_5 : f32 to vector<16x128xf32>
    %17 = arith.select %15, %8, %16 : vector<16x128xi1>, vector<16x128xf32>
    %cst_6 = arith.constant dense<0.000000e+00> : vector<16xf32>
    %18 = vector.multi_reduction <add>, %17, %cst_6 [1] : vector<16x128xf32> to vector<16xf32>
    %19 = vector.shape_cast %18 : vector<16xf32> to vector<16x1xf32>
    %20 = arith.subf %19, %12 : vector<16x1xf32>
    %21 = math.exp %20 : vector<16x1xf32>
    %cst_7 = arith.constant 1.000000e+00 : f32
    %22 = vector.broadcast %cst_7 : f32 to vector<16x1xf32>
    %23 = arith.subf %22, %21 : vector<16x1xf32>
    %24 = arith.mulf %23, %23 : vector<16x1xf32>
    %25 = arith.mulf %24, %20 : vector<16x1xf32>
    %cst_8 = arith.constant 0.000000e+00 : f32
    %26 = vector.broadcast %cst_8 : f32 to vector<16x1xf32>
    %27 = arith.subf %26, %25 : vector<16x1xf32>
    %c0_9 = arith.constant 0 : index
    %c0_10 = arith.constant 0 : index
    %c0_11 = arith.constant 0 : index
    %28 = vector.load %arg4[%c0_9, %c0_10, %c0_11] : memref<1x8x128xf32, #tpu.memory_space<vmem>>, vector<1x8x128xf32>
    %29 = vector.shape_cast %27 : vector<16x1xf32> to vector<1x16x1xf32>
    %cst_12 = arith.constant dense<0.000000e+00> : vector<1xf32>
    %30 = vector.multi_reduction <add>, %29, %cst_12 [1, 2] : vector<1x16x1xf32> to vector<1xf32>
    %31 = vector.shape_cast %30 : vector<1xf32> to vector<1x1x1xf32>
    %32 = vector.extract %31[0, 0, 0] : f32 from vector<1x1x1xf32>
    %33 = vector.broadcast %32 : f32 to vector<1x8x128xf32>
    %34 = arith.addf %28, %33 : vector<1x8x128xf32>
    %c0_13 = arith.constant 0 : index
    %c0_14 = arith.constant 0 : index
    %c0_15 = arith.constant 0 : index
    %35 = vector.load %arg4[%c0_13, %c0_14, %c0_15] : memref<1x8x128xf32, #tpu.memory_space<vmem>>, vector<1x8x128xf32>
    tpu.vector_store %arg4[%c0_13, %c0_14, %c0_15], %34 {strides = array<i32>} : memref<1x8x128xf32, #tpu.memory_space<vmem>>, vector<1x8x128xf32>,
    return
  }
  func.func @transform_0(%arg0: i32, %arg1: i32) -> (i32, i32) {
    %c1_i32 = arith.constant 1 : i32
    %0 = arith.muli %arg0, %c1_i32 : i32
    %1 = arith.addi %0, %arg1 : i32
    %c0_i32 = arith.constant 0 : i32
    %c0_i32_0 = arith.constant 0 : i32
    return %1, %c0_i32 : i32, i32
  }
  func.func @transform_1(%arg0: i32, %arg1: i32) -> (i32, i32) {
    %c1_i32 = arith.constant 1 : i32
    %0 = arith.muli %arg0, %c1_i32 : i32
    %1 = arith.addi %0, %arg1 : i32
    %c0_i32 = arith.constant 0 : i32
    %c0_i32_0 = arith.constant 0 : i32
    return %1, %c0_i32 : i32, i32
  }
  func.func @transform_2(%arg0: i32, %arg1: i32) -> (i32, i32, i32) {
    %c0_i32 = arith.constant 0 : i32
    %c0_i32_0 = arith.constant 0 : i32
    %c0_i32_1 = arith.constant 0 : i32
    return %arg0, %c0_i32, %c0_i32_0 : i32, i32, i32
  }
}

</mosaic_0001>

<bundles_post_ra>
// kernel: tpu_custom_call.1
= control target key start
LH: loop header
LB: loop body
LE: loop exit
PB: predicated region body
PF: predicated region fallthrough
CT: control target
= control target key end

     0   :  { %v197_v2 = vmov 0   ;;  %s229_s0 = inlined_call_operand.vmem [shape: f32[16,128], index: 0, kind: input, shape index: {}]   ;;  %s230_s1 = inlined_call_operand.vmem [shape: s32[16,1], index: 1, kind: input, shape index: {}]   ;;  %s231_s2 = inlined_call_operand.hbm [shape: f32[1,8,128], index: 2, kind: output, shape index: {}]  }
   0x1   :  { %v61_v0 = vld [vmem:[%s229_s0] sm:$0xff]  ;;  %161 = vset.pattern.permute.xlu1 %v197_v2 }
   0x2   :  { %v63_v1 = vld [vmem:[%s230_s1] sm:$0xff]  ;;  %65 = vmax.xlane.f32.xlu0 %v61_v0 }
   0x3   :  { %7 = vsyncpa [#allocation3], 0  ;;  %v62_v3 = vld [vmem:[%s229_s0 + $0x8] sm:$0xff]  ;;  %86 = vperm.xlu1 %161, %v63_v1   ;;  %162 = vset.pattern.permute.xlu0 %v197_v2  ;;  %v83_v11 = vlaneseq  ;;  %vm114_vm2 = vcmask 7168   ;;  %s198_s0 = smov [#allocation2]  }
   0x4   :  { %v64_v4 = vld [vmem:[%s230_s1 + $0x8] sm:$0xff]  ;;  %s136_s1 = sshll.u32 %s198_s0, 4  ;;  %s137_s1 = int_to_ptr.vmem [resolvable:$true] %s136_s1 }
   0x5   :  { %v84_v13 = vand.u32 127, %v83_v11  ;;  %s175_s18 = scalar_lea.vmem %s137_s1, 128  ;;  %p180_p1 = scmp.lt.s32.totalorder %s137_s1, %s137_s1 }
   0x6   :  { %67 = vmax.xlane.f32.xlu0 %v62_v3  ;;  %p176_p0 = scmp.ne.s32.totalorder %s137_s1, %s175_s18  ;;  %p181_p2 = scmp.lt.s32.totalorder %s175_s18, %s175_s18 }
   0x7   :  { %89 = vperm.xlu1 %161, %v64_v4  }
   0x8   :  { %p182_p3 = por %p181_p2, %p180_p1 }
   0xa   :  { %p183_p4 = pnand %p182_p3, %p176_p0 }
  0x7e   :  { %v87_v12 = vpop.permute.xlu1 %86 }
  0x7f   :  { %vm91_vm0 = vcmp.eq.s32.totalorder %v84_v13, %v87_v12 }
  0x82   :  { %v90_v15 = vpop.permute.xlu1 %89 }
  0x83   :  { %vm92_vm1 = vcmp.eq.s32.totalorder %v84_v13, %v90_v15 }
  0x8b   :  { %v66_v5 = vpop.xlane.xlu0 %65 }
  0x8c   :  { %v69_v6 = vsub.f32 %v61_v0, %v66_v5 }
  0x8e   :  { %v71_v7 = vmul.f32 1.442695, %v69_v6  ;;  %v93_v17 = vsel %vm91_vm0, %v69_v6, 0.0 }
  0x8f   :  { %v68_v8 = vpop.xlane.xlu0 %67 }
  0x90   :  { %163 = vpow2.f32 %v71_v7  ;;  %v70_v9 = vsub.f32 %v62_v3, %v68_v8 }
  0x92   :  { %v73_v10 = vmul.f32 1.442695, %v70_v9  ;;  %v94_v18 = vsel %vm92_vm1, %v70_v9, 0.0 }
  0x94   :  { %165 = vpow2.f32 %v73_v10 }
  0x9d   :  { %v164_v14 = vpop.eup %163 }
  0x9e   :  { %75 = vadd.xlane.f32.xlu0 %v164_v14 }
  0xa1   :  { %v166_v16 = vpop.eup %165 }
  0xa2   :  { %95 = vadd.xlane.f32.xlu0 %v93_v17  ;;  %77 = vadd.xlane.f32.xlu1 %v166_v16 }
  0xa6   :  { %97 = vadd.xlane.f32.xlu0 %v94_v18 }
 0x127   :  { %v76_v19 = vpop.xlane.xlu0 %75 }
 0x128   :  { %167 = vlog2.f32 %v76_v19 }
 0x12b   :  { %v78_v20 = vpop.xlane.xlu1 %77  ;;  %v96_v22 = vpop.xlane.xlu0 %95 }
 0x12c   :  { %169 = vlog2.f32 %v78_v20 }
 0x12f   :  { %v98_v28 = vpop.xlane.xlu0 %97 }
 0x135   :  { %v168_v21 = vpop.eup %167 }
 0x136   :  { %v80_v23 = vmul.f32 0.6931472, %v168_v21 }
 0x138   :  { %v99_v24 = vsub.f32 %v96_v22, %v80_v23 }
 0x139   :  { %v170_v25 = vpop.eup %169 }
 0x13a   :  { %v101_v26 = vmul.f32 1.442695, %v99_v24  ;;  %v82_v27 = vmul.f32 0.6931472, %v170_v25 }
 0x13c   :  { %171 = vpow2.f32 %v101_v26  ;;  %v100_v29 = vsub.f32 %v98_v28, %v82_v27 }
 0x13e   :  { %v103_v30 = vmul.f32 1.442695, %v100_v29 }
 0x140   :  { %173 = vpow2.f32 %v103_v30 }
 0x149   :  { %v172_v31 = vpop.eup %171 }
 0x14a   :  { %v105_v32 = vsub.f32 1.0, %v172_v31 }
 0x14c   :  { %v107_v33 = vmul.f32 %v105_v32, %v105_v32 }
 0x14d   :  { %v174_v34 = vpop.eup %173 }
 0x14e   :  { %v109_v35 = vmul.f32 %v107_v33, %v99_v24  ;;  %v106_v36 = vsub.f32 1.0, %v174_v34 }
 0x150   :  { %v108_v37 = vmul.f32 %v106_v36, %v106_v36  ;;  %v111_v38 = vsub.f32 0.0, %v109_v35 }
 0x152   :  { %v110_v39 = vmul.f32 %v108_v37, %v100_v29  ;;  %v115_v41 = vsel %vm114_vm2, %v111_v38, 0.0 }
 0x154   :  { %v112_v40 = vsub.f32 0.0, %v110_v39 }
 0x156   :  { %v116_v42 = vsel %vm114_vm2, %v112_v40, 0.0 }
 0x157   :  { %v117_v43 = vadd.f32 %v116_v42, %v115_v41 }
 0x159   :  { %118 = vadd.xlane.f32.xlu0 %v117_v43 }
 0x1e2   :  { %v119_v44 = vpop.xlane.xlu0 %118 }
 0x1e3   :  { %v120_v45 = vrot.slane %v119_v44, 4 }
 0x1e5   :  { %v121_v46 = vadd.f32 %v120_v45, %v119_v44 }
 0x1e7   :  { %v122_v47 = vrot.slane %v121_v46, 2 }
 0x1e9   :  { %v123_v48 = vadd.f32 %v122_v47, %v121_v46 }
 0x1eb   :  { %v124_v49 = vrot.slane %v123_v48, 1 }
 0x1ed   :  { %v125_v50 = vadd.f32 %v124_v49, %v123_v48 }
 0x1ef   :  { %156 = vpush %v125_v50 }
 0x220   :  { %s157_s17 = spop %156 }
 0x221   :  { %v127_v51 = vstv %s157_s17 }
 0x222   :  { %129 = vst [vmem:[#allocation2] sm:$0xff] %v127_v51 }
 0x223   :  { %186 = shalt.err (!%p183_p4)
}
 0x224   :  { %139 = dma.vmem_to_hbm [thread:$0]  %s137_s1, 128, %s231_s2, [#allocation3]  }
 0x225   :  { %195 = dma.done.wait [#allocation3], 128  }
 0x226   :  { %196 = vsyncadd [#allocation3], 4294967168 }
 0x227   :  { %143 = vsyncpa [#allocation3], 1 }

</bundles_post_ra>
